<compile_context>
chip_gen: v7x
topology: tpu7x:2x2x1
jax: 0.10.0
libtpu: 0.0.40
codegen_flags: <defaults>
</compile_context>

<pallas_src>
import functools

import jax
import jax.numpy as jnp
import numpy as np
from jax import lax
from jax.experimental import pallas as pl
from jax.experimental.pallas import tpu as pltpu

NEG_INF = -1e30                      # exp() underflows to exactly 0.0 in f32/bf16
_VMEM_LIMIT = 48 * 1024 * 1024       # safe on v7x (64 MiB physical), below v5e/v6e 128 MiB


def _pick_tile(dim, requested, align):
    """Largest t <= requested with dim % t == 0 and (t % align == 0 or t == dim)."""
    requested = max(1, min(requested, dim))
    for t in range(requested, 0, -1):
        if dim % t == 0 and (t % align == 0 or t == dim):
            return t
    return dim  # full extent is always a legal block


# ---------------------------------------------------------------------------
# Tiled matmul kernel (projections)
# ---------------------------------------------------------------------------
def _matmul_kernel(x_ref, w_ref, o_ref, acc_ref):
    @pl.when(pl.program_id(2) == 0)
    def _init():
        acc_ref[...] = jnp.zeros(acc_ref.shape, acc_ref.dtype)

    acc_ref[...] += jnp.dot(x_ref[...], w_ref[...],
                            preferred_element_type=jnp.float32)

    @pl.when(pl.program_id(2) == pl.num_programs(2) - 1)
    def _finalize():
        o_ref[...] = acc_ref[...].astype(o_ref.dtype)


def matmul(x, w, *, tm=512, tn=512, tk=1024):
    """x: [M, K], w: [K, N] -> [M, N] (bias=False, matching config.attention_bias=False).
    Dtype-driven: run the model in bf16 and the MXU sees bf16 operands with f32 accumulation."""
    M, K = x.shape
    K2, N = w.shape
    assert K == K2
    tm = _pick_tile(M, tm, 8)
    tk = _pick_tile(K, tk, 128)
    tn = _pick_tile(N, tn, 128)
    grid = (M // tm, N // tn, K // tk)
    return pl.pallas_call(
        _matmul_kernel,
        out_shape=jax.ShapeDtypeStruct((M, N), x.dtype),
        grid=grid,
        in_specs=[
            pl.BlockSpec((tm, tk), lambda i, j, k: (i, k)),
            pl.BlockSpec((tk, tn), lambda i, j, k: (k, j)),
        ],
        out_specs=pl.BlockSpec((tm, tn), lambda i, j, k: (i, j)),
        scratch_shapes=[pltpu.VMEM((tm, tn), jnp.float32)],
        compiler_params=pltpu.CompilerParams(
            dimension_semantics=("parallel", "parallel", "arbitrary"),
            vmem_limit_bytes=_VMEM_LIMIT),
    )(x, w)


# ---------------------------------------------------------------------------
# RoPE + head-split pre-pass (runs ONCE per token; keeps RoPE out of the KV loop)
# ---------------------------------------------------------------------------
def _rotate_half_swap(x, half):
    # rotate_half with the (-x2, x1) sign folded into the (signed) sin -> pure half swap.
    if x.shape[-1] % 128 == 0:
        return pltpu.roll(x, half, axis=x.ndim - 1)     # XLU slot, effectively free
    return jnp.concatenate([x[..., half:], x[..., :half]], axis=-1)


def _rope_split_kernel(qkv_ref, cos_ref, sin_ref, q_ref, k_ref, v_ref, *,
                       head_dim, n_rep, num_kv_heads, scaling):
    D = head_dim
    half = D // 2
    R = n_rep
    Dq = num_kv_heads * R * D
    Dkv = num_kv_heads * D
    tr = qkv_ref.shape[1]

    x = qkv_ref[0]                        # (tr, Dq + 2*Dkv)  fused qkv rows
    cos = cos_ref[...]                    # (tr, D)
    sin = sin_ref[...]                    # signed sin (rotate_half sign folded in)
    cos_q = cos * scaling                 # fold 1/sqrt(head_dim) into the Q-side RoPE
    sin_q = sin * scaling

    for g in range(num_kv_heads):
        # The n_rep query heads of kv group g, packed as (tr*R, D) rows -> one relayout
        # per token here instead of one per (q, k) grid step in the attention kernel.
        q_g = x[:, g * R * D:(g + 1) * R * D].reshape(tr, R, D)
        q_emb = q_g * cos_q[:, None, :] + _rotate_half_swap(q_g, half) * sin_q[:, None, :]
        q_ref[0, g] = q_emb.reshape(tr * R, D).astype(q_ref.dtype)

        k_g = x[:, Dq + g * D:Dq + (g + 1) * D]
        k_ref[0, g] = (k_g * cos + _rotate_half_swap(k_g, half) * sin).astype(k_ref.dtype)

        # v pass-through into the per-group layout (small extra write; avoids re-reading
        # the q/k columns of qkv in the attention hot loop and any wrapper HBM slices).
        v_ref[0, g] = x[:, Dq + Dkv + g * D:Dq + Dkv + (g + 1) * D].astype(v_ref.dtype)


def rope_split(qkv, cos, sin_signed, *, num_heads, num_kv_heads, head_dim, scaling,
               row_block=256):
    B, S, Dtot = qkv.shape
    R = num_heads // num_kv_heads
    D = head_dim
    tr = _pick_tile(S, row_block, 8)
    grid = (B, S // tr)
    q_shape = jax.ShapeDtypeStruct((B, num_kv_heads, S * R, D), qkv.dtype)
    kv_shape = jax.ShapeDtypeStruct((B, num_kv_heads, S, D), qkv.dtype)
    return pl.pallas_call(
        functools.partial(_rope_split_kernel, head_dim=D, n_rep=R,
                          num_kv_heads=num_kv_heads, scaling=scaling),
        grid=grid,
        in_specs=[
            pl.BlockSpec((1, tr, Dtot), lambda b, i: (b, i, 0)),
            pl.BlockSpec((tr, D), lambda b, i: (i, 0)),
            pl.BlockSpec((tr, D), lambda b, i: (i, 0)),
        ],
        out_specs=[
            pl.BlockSpec((1, num_kv_heads, tr * R, D), lambda b, i: (b, 0, i, 0)),
            pl.BlockSpec((1, num_kv_heads, tr, D), lambda b, i: (b, 0, i, 0)),
            pl.BlockSpec((1, num_kv_heads, tr, D), lambda b, i: (b, 0, i, 0)),
        ],
        out_shape=[q_shape, kv_shape, kv_shape],
        compiler_params=pltpu.CompilerParams(
            dimension_semantics=("parallel", "parallel"),
            vmem_limit_bytes=_VMEM_LIMIT),
    )(qkv, cos, sin_signed)


# ---------------------------------------------------------------------------
# Flash attention kernel (default path: no attention-weight materialization)
# ---------------------------------------------------------------------------
def _flash_attn_kernel(q_ref, k_ref, v_ref, o_ref, m_ref, l_ref, acc_ref, *,
                       n_rep, head_dim):
    D = head_dim
    R = n_rep
    n_kv = k_ref.shape[1]
    rows = q_ref.shape[2]                 # tq * R (packed query heads of a kv group)
    tq = rows // R
    tk = k_ref.shape[2]

    qi = pl.program_id(1)
    ki = pl.program_id(2)
    q_start = qi * tq
    q_last = q_start + tq - 1
    k_start = ki * tk

    @pl.when(ki == 0)
    def _init():
        m_ref[...] = jnp.full(m_ref.shape, NEG_INF, m_ref.dtype)
        l_ref[...] = jnp.zeros(l_ref.shape, l_ref.dtype)
        acc_ref[...] = jnp.zeros(acc_ref.shape, acc_ref.dtype)

    # exp in bf16 when the model is bf16 (EUP relief on v6e/v7x); f32 otherwise (v5e / demo).
    exp_dtype = jnp.bfloat16 if v_ref.dtype == jnp.bfloat16 else jnp.float32

    def block_body(apply_mask):
        if apply_mask:
            row_pos = q_start + lax.broadcasted_iota(jnp.int32, (rows, 1), 0) // R
            col_pos = k_start + lax.broadcasted_iota(jnp.int32, (rows, tk), 1)
            causal = col_pos <= row_pos
        for g in range(n_kv):
            q_g = q_ref[0, g]             # (rows, D): RoPE + 1/sqrt(D) already applied
            k_g = k_ref[0, g]             # (tk, D):   RoPE already applied
            v_g = v_ref[0, g]             # (tk, D)
            s = lax.dot_general(q_g, k_g, (((1,), (1,)), ((), ())),
                                preferred_element_type=jnp.float32)
            if apply_mask:
                s = jnp.where(causal, s, NEG_INF)
            m_prev = m_ref[g]
            m_new = jnp.maximum(m_prev, jnp.max(s, axis=-1, keepdims=True))
            alpha = jnp.exp(m_prev - m_new)
            p = jnp.exp((s - m_new).astype(exp_dtype))
            l_ref[g] = alpha * l_ref[g] + jnp.sum(p.astype(jnp.float32),
                                                  axis=-1, keepdims=True)
            acc_ref[g] = alpha * acc_ref[g] + jnp.dot(p.astype(v_g.dtype), v_g,
                                                      preferred_element_type=jnp.float32)
            m_ref[g] = m_new

    # Blocks entirely below the diagonal: no mask work at all.
    is_full = (k_start + tk - 1) <= q_start
    # Blocks straddling the diagonal: masked. Blocks entirely above: neither body runs
    # (and their DMA is avoided via the clamped index_maps in the wrapper).
    is_edge = jnp.logical_and(k_start <= q_last, jnp.logical_not(is_full))

    @pl.when(is_full)
    def _full_block():
        block_body(False)

    @pl.when(is_edge)
    def _edge_block():
        block_body(True)

    @pl.when(ki == pl.num_programs(2) - 1)
    def _finalize():
        for g in range(n_kv):
            l_g = l_ref[g]
            inv_l = pl.reciprocal(l_g, approx=True)
            inv_l = inv_l * (2.0 - l_g * inv_l)          # one Newton step, no divide
            out_g = (acc_ref[g] * inv_l).reshape(tq, R * D)
            # Lane-dense, per-group aligned store into the [tq, num_heads*head_dim] slab.
            o_ref[0, :, g * R * D:(g + 1) * R * D] = out_g.astype(o_ref.dtype)


def flash_attention(q, k, v, *, n_rep, head_dim, out_dtype, q_block=256, k_block=256):
    B, n_kv, _, D = q.shape
    S = k.shape[2]
    R = n_rep
    tq = _pick_tile(S, q_block, 8)
    tk = _pick_tile(S, k_block, 8)
    Dq = n_kv * R * D

    def last_kv_block(i):                 # last kv block intersecting the causal diagonal
        return (i * tq + tq - 1) // tk

    grid = (B, S // tq, S // tk)
    return pl.pallas_call(
        functools.partial(_flash_attn_kernel, n_rep=R, head_dim=D),
        grid=grid,
        in_specs=[
            pl.BlockSpec((1, n_kv, tq * R, D), lambda b, i, j: (b, 0, i, 0)),
            # Clamp causally-dead kv blocks onto the last useful block: the revisited block
            # is already resident, so no fresh DMA is issued for skipped steps.
            pl.BlockSpec((1, n_kv, tk, D),
                         lambda b, i, j: (b, 0, jnp.minimum(j, last_kv_block(i)), 0)),
            pl.BlockSpec((1, n_kv, tk, D),
                         lambda b, i, j: (b, 0, jnp.minimum(j, last_kv_block(i)), 0)),
        ],
        out_specs=pl.BlockSpec((1, tq, Dq), lambda b, i, j: (b, i, 0)),
        out_shape=jax.ShapeDtypeStruct((B, S, Dq), out_dtype),
        scratch_shapes=[
            # NOTE: (.., 1) lane padding is accepted here for compile simplicity; at very large
            # tq these could be merged / re-laid-out to save a few MiB of VMEM.
            pltpu.VMEM((n_kv, tq * R, 1), jnp.float32),          # running max
            pltpu.VMEM((n_kv, tq * R, 1), jnp.float32),          # running sum
            pltpu.VMEM((n_kv, tq * R, D), jnp.float32),          # accumulator
        ],
        compiler_params=pltpu.CompilerParams(
            dimension_semantics=("parallel", "parallel", "arbitrary"),
            vmem_limit_bytes=_VMEM_LIMIT),
    )(q, k, v)


# ---------------------------------------------------------------------------
# Debug path: also materializes the attention probabilities (O(S^2), small-S only)
# ---------------------------------------------------------------------------
def _attn_weights_kernel(q_ref, k_ref, v_ref, o_ref, w_ref, *, n_rep, head_dim):
    D = head_dim
    R = n_rep
    n_kv = k_ref.shape[1]
    rows = q_ref.shape[2]
    tq = rows // R
    S = k_ref.shape[2]

    q_start = pl.program_id(1) * tq
    row_pos = q_start + lax.broadcasted_iota(jnp.int32, (rows, 1), 0) // R
    col_pos = lax.broadcasted_iota(jnp.int32, (rows, S), 1)
    causal = col_pos <= row_pos

    for g in range(n_kv):
        q_g = q_ref[0, g]                 # (rows, D) RoPE'd + pre-scaled
        k_g = k_ref[0, g]                 # (S, D)    RoPE'd
        v_g = v_ref[0, g]                 # (S, D)
        s = lax.dot_general(q_g, k_g, (((1,), (1,)), ((), ())),
                            preferred_element_type=jnp.float32)
        s = jnp.where(causal, s, NEG_INF)
        s = s - jnp.max(s, axis=-1, keepdims=True)
        p = jnp.exp(s)
        p = p / jnp.sum(p, axis=-1, keepdims=True)       # exact (debug / parity path)
        w_ref[0, g] = p.astype(w_ref.dtype)
        out_g = jnp.dot(p.astype(v_g.dtype), v_g, preferred_element_type=jnp.float32)
        o_ref[0, :, g * R * D:(g + 1) * R * D] = out_g.reshape(tq, R * D).astype(o_ref.dtype)


def attention_with_weights(q, k, v, *, n_rep, head_dim, out_dtype, q_block=128):
    # TODO(synk): this path streams full-S K/V per q block; it is debug-only and will not fit
    # VMEM for very long sequences. The default flash path is the production path.
    B, n_kv, _, D = q.shape
    S = k.shape[2]
    R = n_rep
    tq = _pick_tile(S, q_block, 8)
    Dq = n_kv * R * D
    grid = (B, S // tq)
    out, w = pl.pallas_call(
        functools.partial(_attn_weights_kernel, n_rep=R, head_dim=D),
        grid=grid,
        in_specs=[
            pl.BlockSpec((1, n_kv, tq * R, D), lambda b, i: (b, 0, i, 0)),
            pl.BlockSpec((1, n_kv, S, D), lambda b, i: (b, 0, 0, 0)),
            pl.BlockSpec((1, n_kv, S, D), lambda b, i: (b, 0, 0, 0)),
        ],
        out_specs=[
            pl.BlockSpec((1, tq, Dq), lambda b, i: (b, i, 0)),
            pl.BlockSpec((1, n_kv, tq * R, S), lambda b, i: (b, 0, i, 0)),
        ],
        out_shape=[
            jax.ShapeDtypeStruct((B, S, Dq), out_dtype),
            jax.ShapeDtypeStruct((B, n_kv, S * R, S), out_dtype),
        ],
        compiler_params=pltpu.CompilerParams(
            dimension_semantics=("parallel", "parallel"),
            vmem_limit_bytes=_VMEM_LIMIT),
    )(q, k, v)
    # rows interleave (position, head-rep) -> standard [B, num_heads, S, S]
    w = w.reshape(B, n_kv, S, R, S).transpose(0, 1, 3, 2, 4).reshape(B, n_kv * R, S, S)
    return out, w


# ---------------------------------------------------------------------------
# Wrapper
# ---------------------------------------------------------------------------
def prepare_params(wq, wk, wv, wo):
    """Concatenate q/k/v projection weights ONCE at parameter-setup time."""
    return {"w_qkv": jnp.concatenate([wq, wk, wv], axis=1), "wo": wo}


def llama_attention_forward(hidden_states, cos, sin, params,
                            num_heads, num_kv_heads, head_dim,
                            *, output_attentions=False,
                            q_block_size=256, k_block_size=256):
    """hidden_states: [B, S, H]; cos/sin: [S, head_dim] (position-only); params: prepare_params()."""
    B, S, H = hidden_states.shape
    R = num_heads // num_kv_heads
    scaling = head_dim ** -0.5
    dtype = hidden_states.dtype
    Dq = num_heads * head_dim

    # 1) Fused qkv projection: single pass over the activations.
    qkv = matmul(hidden_states.reshape(B * S, H), params["w_qkv"]).reshape(B, S, -1)

    # 2) RoPE (once per token) + head split; fold rotate_half's sign into sin and the
    #    1/sqrt(head_dim) scaling into the Q-side cos/sin.
    half = head_dim // 2
    sign = jnp.concatenate([-jnp.ones((half,), cos.dtype), jnp.ones((half,), cos.dtype)])
    sin_signed = sin * sign
    q, k, v = rope_split(qkv, cos, sin_signed, num_heads=num_heads,
                         num_kv_heads=num_kv_heads, head_dim=head_dim, scaling=scaling)

    # 3) Causal attention.
    if output_attentions:
        attn_out, attn_w = attention_with_weights(
            q, k, v, n_rep=R, head_dim=head_dim, out_dtype=dtype)
    else:
        attn_out = flash_attention(
            q, k, v, n_rep=R, head_dim=head_dim, out_dtype=dtype,
            q_block=q_block_size, k_block=k_block_size)
        attn_w = None

    # 4) Output projection.
    out = matmul(attn_out.reshape(B * S, Dq), params["wo"]).reshape(B, S, H)
    return out, attn_w


# ---------------------------------------------------------------------------
# Pure-JAX reference (mirrors the PyTorch module)
# ---------------------------------------------------------------------------
def reference_forward(hidden_states, cos, sin, wq, wk, wv, wo,
                      num_heads, num_kv_heads, head_dim):
    B, S, H = hidden_states.shape
    n_rep = num_heads // num_kv_heads
    scaling = head_dim ** -0.5
    dtype = hidden_states.dtype
    x2d = hidden_states.reshape(B * S, H)
    q = (x2d @ wq).reshape(B, S, num_heads, head_dim).transpose(0, 2, 1, 3)
    k = (x2d @ wk).reshape(B, S, num_kv_heads, head_dim).transpose(0, 2, 1, 3)
    v = (x2d @ wv).reshape(B, S, num_kv_heads, head_dim).transpose(0, 2, 1, 3)

    half = head_dim // 2

    def rope(x):
        rot = jnp.concatenate([-x[..., half:], x[..., :half]], axis=-1)
        return x * cos[None, None] + rot * sin[None, None]

    q, k = rope(q), rope(k)
    k = jnp.repeat(k, n_rep, axis=1)
    v = jnp.repeat(v, n_rep, axis=1)
    i = jnp.arange(S)[:, None]
    j = jnp.arange(S)[None, :]
    causal = jnp.where(j <= i, 0.0, -1e9).astype(jnp.float32)
    s = jnp.einsum("bhqd,bhkd->bhqk", q, k) * scaling + causal[None, None]
    p = jax.nn.softmax(s.astype(jnp.float32), axis=-1).astype(dtype)
    o = jnp.einsum("bhqk,bhkd->bhqd", p, v)
    o = o.transpose(0, 2, 1, 3).reshape(B * S, num_heads * head_dim)
    return (o @ wo).reshape(B, S, H), p


# ---------------------------------------------------------------------------
if __name__ == "__main__":
    B, S = 2, 8
    hidden_size = 64
    num_heads = 4
    num_kv_heads = 2                       # GQA: num_key_value_groups = 2
    head_dim = hidden_size // num_heads    # 16
    rope_theta = 10000.0

    key = jax.random.PRNGKey(0)
    k_x, k_q, k_k, k_v, k_o = jax.random.split(key, 5)

    hidden_states = jax.random.normal(k_x, (B, S, hidden_size), dtype=jnp.float32)

    scale = 0.05
    wq = scale * jax.random.normal(k_q, (hidden_size, num_heads * head_dim), jnp.float32)
    wk = scale * jax.random.normal(k_k, (hidden_size, num_kv_heads * head_dim), jnp.float32)
    wv = scale * jax.random.normal(k_v, (hidden_size, num_kv_heads * head_dim), jnp.float32)
    wo = scale * jax.random.normal(k_o, (num_heads * head_dim, hidden_size), jnp.float32)

    # Rotary position embeddings, position-only [S, head_dim] (no batch broadcast).
    inv_freq = 1.0 / (rope_theta ** (jnp.arange(0, head_dim, 2, dtype=jnp.float32) / head_dim))
    pos = jnp.arange(S, dtype=jnp.float32)
    freqs = pos[:, None] * inv_freq[None, :]
    emb = jnp.concatenate([freqs, freqs], axis=-1)
    cos = jnp.cos(emb)
    sin = jnp.sin(emb)

    params = prepare_params(wq, wk, wv, wo)   # w_qkv concatenated once, not per forward

    ref_out, ref_w = reference_forward(
        hidden_states, cos, sin, wq, wk, wv, wo, num_heads, num_kv_heads, head_dim)

    # --- default (flash) path: no attention-weight materialization -------------------
    out, attn_w = llama_attention_forward(
        hidden_states, cos, sin, params, num_heads, num_kv_heads, head_dim)
    out = jax.block_until_ready(out)
    assert out.shape == (B, S, hidden_size)
    assert attn_w is None
    # Looser tolerance: approx reciprocal (+1 Newton step) and online-softmax reassociation.
    np.testing.assert_allclose(np.asarray(out), np.asarray(ref_out), atol=2e-3, rtol=2e-3)

    # --- debug path: also returns the attention probabilities ------------------------
    out_dbg, attn_w_dbg = llama_attention_forward(
        hidden_states, cos, sin, params, num_heads, num_kv_heads, head_dim,
        output_attentions=True)
    out_dbg = jax.block_until_ready(out_dbg)
    attn_w_dbg = jax.block_until_ready(attn_w_dbg)
    assert attn_w_dbg.shape == (B, num_heads, S, S)
    np.testing.assert_allclose(np.asarray(out_dbg), np.asarray(ref_out), atol=5e-4, rtol=1e-3)
    np.testing.assert_allclose(np.asarray(attn_w_dbg), np.asarray(ref_w), atol=5e-4, rtol=1e-3)

    # TODO(synk): past_key_value (KV cache update), attention dropout (training mode) and
    # externally supplied padding masks are not implemented; this is eval-mode causal attention.
    print("KERNEL_OK")
</pallas_src>

<mosaic_0001>
module attributes {stable_mosaic.version = 11 : i64} {
  func.func @_matmul_kernel(%arg0: i32, %arg1: i32, %arg2: i32, %arg3: memref<16x64xf32, #tpu.memory_space<vmem>>, %arg4: memref<64x128xf32, #tpu.memory_space<vmem>>, %arg5: memref<16x128xf32, #tpu.memory_space<vmem>>, %arg6: memref<16x128xf32, #tpu.memory_space<vmem>>) attributes {dimension_semantics = [#tpu.dimension_semantics<parallel>, #tpu.dimension_semantics<parallel>, #tpu.dimension_semantics<arbitrary>], iteration_bounds = array<i64: 1, 1, 1>, scalar_prefetch = 0 : i64, scratch_operands = 1 : i64, tpu.core_type = #tpu.core_type<tc>, window_params = [{transform_indices = @transform_0, window_bounds = array<i64: 16, 64>}, {transform_indices = @transform_1, window_bounds = array<i64: 64, 128>}, {transform_indices = @transform_2, window_bounds = array<i64: 16, 128>}]} {
    %c0_i32 = arith.constant 0 : i32
    %0 = arith.cmpi eq, %arg2, %c0_i32 : i32
    %1 = arith.extui %0 : i1 to i32
    %c0_i32_0 = arith.constant 0 : i32
    %2 = arith.cmpi ne, %1, %c0_i32_0 : i32
    scf.if %2 {
      %cst_10 = arith.constant 0.000000e+00 : f32
      %12 = vector.broadcast %cst_10 : f32 to vector<16x128xf32>
      %c0_11 = arith.constant 0 : index
      %c0_12 = arith.constant 0 : index
      %13 = vector.load %arg6[%c0_11, %c0_12] : memref<16x128xf32, #tpu.memory_space<vmem>>, vector<16x128xf32>
      tpu.vector_store %arg6[%c0_11, %c0_12], %12 {strides = array<i32>} : memref<16x128xf32, #tpu.memory_space<vmem>>, vector<16x128xf32>,
    } else {
    }
    %c0 = arith.constant 0 : index
    %c0_1 = arith.constant 0 : index
    %3 = vector.load %arg6[%c0, %c0_1] : memref<16x128xf32, #tpu.memory_space<vmem>>, vector<16x128xf32>
    %c0_2 = arith.constant 0 : index
    %c0_3 = arith.constant 0 : index
    %4 = vector.load %arg3[%c0_2, %c0_3] : memref<16x64xf32, #tpu.memory_space<vmem>>, vector<16x64xf32>
    %c0_4 = arith.constant 0 : index
    %c0_5 = arith.constant 0 : index
    %5 = vector.load %arg4[%c0_4, %c0_5] : memref<64x128xf32, #tpu.memory_space<vmem>>, vector<64x128xf32>
    %cst = arith.constant dense<0.000000e+00> : vector<16x128xf32>
    %6 = tpu.matmul %4, %5, %cst {dimension_numbers = #tpu.dot_dimension_numbers<[1], [0], [0], [1], [0, 0, 1, 1], [], []>} : vector<16x64xf32>, vector<64x128xf32>, vector<16x128xf32> -> vector<16x128xf32>
    %7 = arith.addf %3, %6 : vector<16x128xf32>
    %c0_6 = arith.constant 0 : index
    %c0_7 = arith.constant 0 : index
    %8 = vector.load %arg6[%c0_6, %c0_7] : memref<16x128xf32, #tpu.memory_space<vmem>>, vector<16x128xf32>
    tpu.vector_store %arg6[%c0_6, %c0_7], %7 {strides = array<i32>} : memref<16x128xf32, #tpu.memory_space<vmem>>, vector<16x128xf32>,
    %c0_i32_8 = arith.constant 0 : i32
    %9 = arith.cmpi eq, %arg2, %c0_i32_8 : i32
    %10 = arith.extui %9 : i1 to i32
    %c0_i32_9 = arith.constant 0 : i32
    %11 = arith.cmpi ne, %10, %c0_i32_9 : i32
    scf.if %11 {
      %c0_10 = arith.constant 0 : index
      %c0_11 = arith.constant 0 : index
      %12 = vector.load %arg6[%c0_10, %c0_11] : memref<16x128xf32, #tpu.memory_space<vmem>>, vector<16x128xf32>
      %c0_12 = arith.constant 0 : index
      %c0_13 = arith.constant 0 : index
      %13 = vector.load %arg5[%c0_12, %c0_13] : memref<16x128xf32, #tpu.memory_space<vmem>>, vector<16x128xf32>
      tpu.vector_store %arg5[%c0_12, %c0_13], %12 {strides = array<i32>} : memref<16x128xf32, #tpu.memory_space<vmem>>, vector<16x128xf32>,
    } else {
    }
    return
  }
  func.func @transform_0(%arg0: i32, %arg1: i32, %arg2: i32) -> (i32, i32) {
    %c0_i32 = arith.constant 0 : i32
    return %arg0, %arg2 : i32, i32
  }
  func.func @transform_1(%arg0: i32, %arg1: i32, %arg2: i32) -> (i32, i32) {
    %c0_i32 = arith.constant 0 : i32
    return %arg2, %arg1 : i32, i32
  }
  func.func @transform_2(%arg0: i32, %arg1: i32, %arg2: i32) -> (i32, i32) {
    %c0_i32 = arith.constant 0 : i32
    return %arg0, %arg1 : i32, i32
  }
}

</mosaic_0001>

<bundles_post_ra>
// kernel: tpu_custom_call.1
= control target key start
LH: loop header
LB: loop body
LE: loop exit
PB: predicated region body
PF: predicated region fallthrough
CT: control target
= control target key end

     0   :  { %7 = vsyncpa [#allocation4], 0  ;;  %s360_s0 = inlined_call_operand.hbm [shape: f32[16,64], index: 0, kind: input, shape index: {}]   ;;  %s361_s1 = inlined_call_operand.hbm [shape: f32[64,128], index: 1, kind: input, shape index: {}]   ;;  %s362_s2 = inlined_call_operand.hbm [shape: f32[16,128], index: 2, kind: output, shape index: {}]  }
   0x1   :  { %8 = vsyncpa [#allocation7], 0 }
   0x2   :  { %9 = vsyncpa [#allocation5], 0  ;;  %s293_s9 = smov [#allocation3]   ;;  %s221_s13 = scalar_lea.hbm %s360_s0, 256 }
   0x3   :  { %s15_s10 = sshll.u32 %s293_s9, 4  ;;  %p222_p0 = scmp.ne.s32.totalorder %s360_s0, %s221_s13  ;;  %s16_s10 = int_to_ptr.vmem [resolvable:$true] %s15_s10 }
   0x4   :  { %p225_p1 = scmp.lt.u32.totalorder %s221_s13, %s360_s0 }
   0x6   :  { %p227_p2 = pnand %p225_p1, %p222_p0 }
   0x8   :  { %230 = shalt.err (!%p227_p2)
}
   0x9   :  { %s231_s18 = scalar_lea.vmem %s16_s10, 256  ;;  %p236_p4 = scmp.lt.s32.totalorder %s16_s10, %s16_s10 }
   0xa   :  { %p232_p3 = scmp.ne.s32.totalorder %s16_s10, %s231_s18  ;;  %p237_p5 = scmp.lt.s32.totalorder %s231_s18, %s231_s18 }
   0xc   :  { %p238_p6 = por %p237_p5, %p236_p4 }
   0xe   :  { %p239_p7 = pnand %p238_p6, %p232_p3 }
  0x10   :  { %242 = shalt.err (!%p239_p7)
}
  0x11   :  { %s294_s19 = smov 128   ;;  %s295_s20 = smov 8  }
  0x12   :  { %21 = dma.hbm_to_vmem [thread:$0]  %s360_s0, 256, %s16_s10, [#allocation4], %s294_s19, %s294_s19, %s295_s20  }
  0x13   :  { %s296_s23 = smov [#allocation6]   ;;  %s243_s27 = scalar_lea.hbm %s361_s1, 1024 }
  0x14   :  { %s27_s24 = sshll.u32 %s296_s23, 4  ;;  %p244_p8 = scmp.ne.s32.totalorder %s361_s1, %s243_s27  ;;  %s28_s24 = int_to_ptr.vmem [resolvable:$true] %s27_s24 }
  0x15   :  { %p247_p9 = scmp.lt.u32.totalorder %s243_s27, %s361_s1 }
  0x17   :  { %p249_p10 = pnand %p247_p9, %p244_p8 }
  0x19   :  { %252 = shalt.err (!%p249_p10)
}
  0x1a   :  { %s253_s4 = scalar_lea.vmem %s28_s24, 1024  ;;  %p258_p12 = scmp.lt.s32.totalorder %s28_s24, %s28_s24 }
  0x1b   :  { %p254_p11 = scmp.ne.s32.totalorder %s28_s24, %s253_s4  ;;  %p259_p13 = scmp.lt.s32.totalorder %s253_s4, %s253_s4 }
  0x1d   :  { %p260_p0 = por %p259_p13, %p258_p12 }
  0x1f   :  { %p261_p1 = pnand %p260_p0, %p254_p11 }
  0x21   :  { %264 = shalt.err (!%p261_p1)
}
  0x22   :  { %33 = dma.hbm_to_vmem [thread:$0]  %s361_s1, 1024, %s28_s24, [#allocation7], %s294_s19, %s294_s19, %s295_s20  }
  0x23   :  { %287 = dma.done.wait [#allocation4], 256  }
  0x24   :  { %288 = vsyncadd [#allocation4], 4294967040 }
  0x25   :  { %289 = dma.done.wait [#allocation7], 1024  }
  0x26   :  { %290 = vsyncadd [#allocation7], 4294966272  ;;  %v50_v0 = vld [vmem:[#allocation6] sm:$0xff]  ;;  %v51_v1 = vld [vmem:[#allocation6 + $0x8] sm:$0xff]  ;;  %vm58_vm0 = vcmask 523264   ;;  %s297_s1 = smov [#allocation8]  }
  0x27   :  { %v52_v2 = vld [vmem:[#allocation6 + $0x10] sm:$0xff]  ;;  %v200_v3 = vpack.c.bf16 %v51_v1, %v50_v0  ;;  %v53_v4 = vld [vmem:[#allocation6 + $0x18] sm:$0xff]  ;;  %v54_v6 = vld [vmem:[#allocation6 + $0x20] sm:$0xff]  ;;  %s156_s6 = sshll.u32 %s297_s1, 4  ;;  %s157_s6 = int_to_ptr.vmem [resolvable:$true] %s156_s6 }
  0x28   :  { %v204_v5 = vpack.c.bf16 %v53_v4, %v52_v2  ;;  %v55_v7 = vld [vmem:[#allocation6 + $0x28] sm:$0xff]  ;;  %v48_v8 = vld [vmem:[#allocation3] sm:$0xff]  ;;  %v57_v11 = vld [vmem:[#allocation6 + $0x38] sm:$0xff]  ;;  %s265_s7 = scalar_lea.vmem %s157_s6, 256  ;;  %p270_p3 = scmp.lt.s32.totalorder %s157_s6, %s157_s6 }
  0x29   :  { %201 = vmatprep.subr.bf16.mxu0 %v200_v3  ;;  %197 = vmatprep.mubr.msk.f32.mxu0 %vm58_vm0, %v48_v8  ;;  %v208_v9 = vpack.c.bf16 %v55_v7, %v54_v6  ;;  %v56_v10 = vld [vmem:[#allocation6 + $0x30] sm:$0xff]  ;;  %v49_v13 = vld [vmem:[#allocation3 + $0x8] sm:$0xff]  ;;  %p266_p2 = scmp.ne.s32.totalorder %s157_s6, %s265_s7  ;;  %p271_p4 = scmp.lt.s32.totalorder %s265_s7, %s265_s7 }
  0x2a   :  { %203 = vmatpush3.bf16.msra.mxu0 %v200_v3  ;;  %v212_v12 = vpack.c.bf16 %v57_v11, %v56_v10 }
  0x2b   :  { %205 = vmatprep.subr.bf16.mxu0 %v204_v5  ;;  %p272_p5 = por %p271_p4, %p270_p3 }
  0x2d   :  { %p273_p6 = pnand %p272_p5, %p266_p2 }
  0x2e   :  { %207 = vmatpush3.bf16.msra.mxu0 %v204_v5 }
  0x2f   :  { %209 = vmatprep.subr.bf16.mxu0 %v208_v9 }
  0x32   :  { %211 = vmatpush3.bf16.msra.mxu0 %v208_v9 }
  0x33   :  { %213 = vmatprep.subr.bf16.mxu0 %v212_v12 }
  0x36   :  { %215 = vmatpush3.bf16.msra.mxu0 %v212_v12 }
  0x39   :  { %198 = vmatmul.mubr.msk.f32.vlgmr.msra.gmra.mrb[0].mxu0 %vm58_vm0, %v49_v13 }
 0x10c   :  { %v199_v14 = vpop.f32.mrb[0].mxu0 }
 0x10d   :  { %150 = vst [vmem:[#allocation8 + $0x8] sm:$0xff] %v199_v14  ;;  %v131_v15 = vpop.f32.mrb[1].mxu0 }
 0x10e   :  { %149 = vst [vmem:[#allocation8] sm:$0xff] %v131_v15 }
 0x10f   :  { %276 = shalt.err (!%p273_p6)
}
 0x110   :  { %s277_s10 = scalar_lea.hbm %s362_s2, 256 }
 0x111   :  { %p278_p7 = scmp.ne.s32.totalorder %s362_s2, %s277_s10  ;;  %p281_p8 = scmp.lt.u32.totalorder %s277_s10, %s362_s2 }
 0x113   :  { %p283_p9 = pnand %p281_p8, %p278_p7 }
 0x115   :  { %286 = shalt.err (!%p283_p9)
}
 0x116   :  { %162 = dma.vmem_to_hbm [thread:$0]  %s157_s6, 256, %s362_s2, [#allocation5], %s294_s19, %s294_s19, %s295_s20  }
 0x117   :  { %291 = dma.done.wait [#allocation5], 256  }
 0x118   :  { %292 = vsyncadd [#allocation5], 4294967040 }
 0x119   :  { %166 = vsyncpa [#allocation4], 1 }
 0x11a   :  { %167 = vsyncpa [#allocation7], 1 }
 0x11b   :  { %168 = vsyncpa [#allocation5], 1 }

</bundles_post_ra>
